<compile_context>
chip_gen: v7x
topology: tpu7x:2x2x1
jax: 0.10.0
libtpu: 0.0.40
codegen_flags: <defaults>
</compile_context>

<pallas_src>
import jax
import jax.numpy as jnp
from jax import lax
from jax.experimental import pallas as pl
from jax.experimental.pallas import tpu as pltpu

MULT_FACT = 1.0          # mult_fact from Model_with_TTA.__init__
KH = KW = 3              # 3x3 conv, padding=1, stride=1


def _make_tta_conv_kernel(N, Cin_p, Wp, HWp_pad):
    K9C = KH * KW * Cin_p

    def kernel(x_ref, w_ref, o_ref, col_ref):
        # x_ref:   (N, Cin_p, flat)       zero-padded NCHW image, (h, w) -> h*Wp + w
        # w_ref:   (2*Cout, K9C)          im2col weights: rows [0:Cout]   = m/2 * w
        #                                 rows [Cout:2C] = 1/2 * flip_kw(w)
        # o_ref:   (2*Cout, N*HWp_pad)    wide accumulator, lane-dense (mult. of 128)
        # col_ref: (K9C, N*HWp_pad)       VMEM im2col scratch
        #
        # Build the im2col matrix: row block tap*Cin_p:(tap+1)*Cin_p of column
        # block n*HWp_pad:(n+1)*HWp_pad is image n shifted by (kh, kw).
        for n in range(N):                               # tiny static batch loop
            for kh in range(KH):                         # static 3x3 tap loop
                for kw in range(KW):
                    tap = kh * KW + kw
                    off = kh * Wp + kw
                    col_ref[tap * Cin_p:(tap + 1) * Cin_p,
                            n * HWp_pad:(n + 1) * HWp_pad] = (
                        x_ref[n, :, off:off + HWp_pad])
        # One K=72 MXU matmul for both TTA branches and both batches.
        o_ref[...] = jnp.dot(w_ref[...], col_ref[...],
                             preferred_element_type=jnp.float32
                             ).astype(o_ref.dtype)

    return kernel


def model_with_tta(x_nchw, weight, bias, mult_fact=MULT_FACT):
    """x_nchw: (N, Cin, H, W) f32.  weight: (Cout, Cin, KH, KW).  bias: (Cout,)."""
    N, Cin, H, W = x_nchw.shape
    Cout = weight.shape[0]
    Hp, Wp = H + 2, W + 2
    HWp = H * Wp
    HWp_pad = ((HWp + 127) // 128) * 128           # lane-dense output width
    Cin_p = ((Cin + 7) // 8) * 8                   # pad contraction dim to sublanes
    K9C = KH * KW * Cin_p

    # --- input: one zero-pad + free reshape; stays NCHW -------------------------
    # Enough extra zero rows at the bottom so every shifted (Cin_p, HWp_pad) view
    # of the flat buffer is in bounds (extra columns are garbage & dropped later).
    max_off = (KH - 1) * Wp + (KW - 1)
    rows_needed = -(-(max_off + HWp_pad) // Wp)
    extra = max(0, rows_needed - Hp)
    x_pad = jnp.pad(x_nchw, ((0, 0), (0, Cin_p - Cin), (1, 1 + extra), (1, 1)))
    flat = (Hp + extra) * Wp
    x_flat = x_pad.reshape(N, Cin_p, flat)

    # --- weights/bias: fold the TTA combine into the parameters -----------------
    #   out = m/2 * conv(x, w) + 1/2 * flip_W(conv(x, flip_kw(w))) + (m+1)/2 * b
    # (the flip_W of the second branch reconstructs conv(flip_W(x), w) exactly).
    w_pad = jnp.pad(weight, ((0, 0), (0, Cin_p - Cin), (0, 0), (0, 0)))
    w1 = w_pad * (0.5 * mult_fact)                 # (Cout, Cin_p, KH, KW)
    w2 = w_pad[:, :, :, ::-1] * 0.5                # kw-flipped kernel
    w_cat = jnp.concatenate([w1, w2], axis=0)      # (2*Cout, Cin_p, KH, KW)
    # Row ordering of the im2col scratch is (tap major, channel minor).
    w_mat = jnp.transpose(w_cat, (0, 2, 3, 1)).reshape(2 * Cout, K9C)
    b_comb = bias * (0.5 * (mult_fact + 1.0))

    kernel = _make_tta_conv_kernel(N, Cin_p, Wp, HWp_pad)
    wide = pl.pallas_call(
        kernel,
        out_shape=jax.ShapeDtypeStruct((2 * Cout, N * HWp_pad), jnp.float32),
        grid_spec=pltpu.PrefetchScalarGridSpec(
            num_scalar_prefetch=0,
            grid=(1,),                              # collapsed: one step, no per-step overhead
            in_specs=[
                pl.BlockSpec((N, Cin_p, flat), lambda i: (0, 0, 0)),
                pl.BlockSpec((2 * Cout, K9C), lambda i: (0, 0)),
            ],
            out_specs=pl.BlockSpec((2 * Cout, N * HWp_pad), lambda i: (0, 0)),
            scratch_shapes=[pltpu.VMEM((K9C, N * HWp_pad), jnp.float32)],
        ),
        compiler_params=pltpu.CompilerParams(
            dimension_semantics=("arbitrary",)),
    )(x_flat, w_mat)

    # --- tiny wrapper epilogue (~36 KB): drop padded columns, un-flip branch 2 --
    wide = wide.reshape(2 * Cout, N, HWp_pad)[:, :, :HWp]
    wide = wide.reshape(2 * Cout, N, H, Wp)[..., :W]
    wide = jnp.transpose(wide, (1, 0, 2, 3))                  # (N, 2*Cout, H, W)
    y1 = wide[:, :Cout]                                       # m/2 * conv(x, w)
    y2 = wide[:, Cout:]                                       # 1/2 * conv(x, flip_kw(w))
    out = y1 + y2[..., ::-1] + b_comb.reshape(1, Cout, 1, 1)
    return out                                                # (N, Cout, H, W)


def _reference(x_nchw, weight, bias, mult_fact=MULT_FACT):
    """Pure-JAX reference mirroring the PyTorch forward (for correctness check)."""
    def conv(x):
        y = lax.conv_general_dilated(
            x, weight, window_strides=(1, 1), padding=((1, 1), (1, 1)),
            dimension_numbers=("NCHW", "OIHW", "NCHW"))
        return y + bias.reshape(1, -1, 1, 1)
    out = conv(x_nchw) * mult_fact
    out = out + conv(jnp.flip(x_nchw, axis=3))
    return out / 2.0


if __name__ == "__main__":
    # small deterministic shapes: batch=2, Cin=4, H=W=16, Cout=8
    N, Cin, H, W, Cout = 2, 4, 16, 16, 8
    key = jax.random.PRNGKey(0)
    kx, wkey, bkey = jax.random.split(key, 3)
    x = jax.random.normal(kx, (N, Cin, H, W), dtype=jnp.float32)
    weight = jax.random.normal(wkey, (Cout, Cin, KH, KW), dtype=jnp.float32) * 0.1
    bias = jax.random.normal(bkey, (Cout,), dtype=jnp.float32) * 0.1

    out = jax.block_until_ready(model_with_tta(x, weight, bias))
    ref = jax.block_until_ready(_reference(x, weight, bias))

    assert out.shape == (N, Cout, H, W)
    assert jnp.allclose(out, ref, atol=1e-4, rtol=1e-4), "mismatch vs reference"

    print("KERNEL_OK")
</pallas_src>

<mosaic_0001>
module attributes {stable_mosaic.version = 11 : i64} {
  func.func @kernel(%arg0: i32, %arg1: memref<2x8x432xf32, #tpu.memory_space<vmem>>, %arg2: memref<16x72xf32, #tpu.memory_space<vmem>>, %arg3: memref<16x768xf32, #tpu.memory_space<vmem>>, %arg4: memref<72x768xf32, #tpu.memory_space<vmem>>) attributes {dimension_semantics = [#tpu.dimension_semantics<arbitrary>], iteration_bounds = array<i64: 1>, scalar_prefetch = 0 : i64, scratch_operands = 1 : i64, tpu.core_type = #tpu.core_type<tc>, window_params = [{pipeline_mode = #tpu.pipeline_mode<synchronous>, transform_indices = @transform_0, window_bounds = array<i64: 2, 8, 432>}, {pipeline_mode = #tpu.pipeline_mode<synchronous>, transform_indices = @transform_1, window_bounds = array<i64: 16, 72>}, {pipeline_mode = #tpu.pipeline_mode<synchronous>, transform_indices = @transform_2, window_bounds = array<i64: 16, 768>}]} {
    %c0 = arith.constant 0 : index
    %c0_0 = arith.constant 0 : index
    %c0_1 = arith.constant 0 : index
    %0 = vector.load %arg1[%c0, %c0_0, %c0_1] : memref<2x8x432xf32, #tpu.memory_space<vmem>>, vector<1x8x384xf32>
    %1 = vector.shape_cast %0 : vector<1x8x384xf32> to vector<8x384xf32>
    %c0_2 = arith.constant 0 : index
    %c0_3 = arith.constant 0 : index
    %2 = vector.load %arg4[%c0_2, %c0_3] : memref<72x768xf32, #tpu.memory_space<vmem>>, vector<8x384xf32>
    tpu.vector_store %arg4[%c0_2, %c0_3], %1 {strides = array<i32>} : memref<72x768xf32, #tpu.memory_space<vmem>>, vector<8x384xf32>,
    %c0_4 = arith.constant 0 : index
    %c0_5 = arith.constant 0 : index
    %c1 = arith.constant 1 : index
    %3 = vector.load %arg1[%c0_4, %c0_5, %c1] : memref<2x8x432xf32, #tpu.memory_space<vmem>>, vector<1x8x384xf32>
    %4 = vector.shape_cast %3 : vector<1x8x384xf32> to vector<8x384xf32>
    %c8 = arith.constant 8 : index
    %c0_6 = arith.constant 0 : index
    %5 = vector.load %arg4[%c8, %c0_6] : memref<72x768xf32, #tpu.memory_space<vmem>>, vector<8x384xf32>
    tpu.vector_store %arg4[%c8, %c0_6], %4 {strides = array<i32>} : memref<72x768xf32, #tpu.memory_space<vmem>>, vector<8x384xf32>,
    %c0_7 = arith.constant 0 : index
    %c0_8 = arith.constant 0 : index
    %c2 = arith.constant 2 : index
    %6 = vector.load %arg1[%c0_7, %c0_8, %c2] : memref<2x8x432xf32, #tpu.memory_space<vmem>>, vector<1x8x384xf32>
    %7 = vector.shape_cast %6 : vector<1x8x384xf32> to vector<8x384xf32>
    %c16 = arith.constant 16 : index
    %c0_9 = arith.constant 0 : index
    %8 = vector.load %arg4[%c16, %c0_9] : memref<72x768xf32, #tpu.memory_space<vmem>>, vector<8x384xf32>
    tpu.vector_store %arg4[%c16, %c0_9], %7 {strides = array<i32>} : memref<72x768xf32, #tpu.memory_space<vmem>>, vector<8x384xf32>,
    %c0_10 = arith.constant 0 : index
    %c0_11 = arith.constant 0 : index
    %c18 = arith.constant 18 : index
    %9 = vector.load %arg1[%c0_10, %c0_11, %c18] : memref<2x8x432xf32, #tpu.memory_space<vmem>>, vector<1x8x384xf32>
    %10 = vector.shape_cast %9 : vector<1x8x384xf32> to vector<8x384xf32>
    %c24 = arith.constant 24 : index
    %c0_12 = arith.constant 0 : index
    %11 = vector.load %arg4[%c24, %c0_12] : memref<72x768xf32, #tpu.memory_space<vmem>>, vector<8x384xf32>
    tpu.vector_store %arg4[%c24, %c0_12], %10 {strides = array<i32>} : memref<72x768xf32, #tpu.memory_space<vmem>>, vector<8x384xf32>,
    %c0_13 = arith.constant 0 : index
    %c0_14 = arith.constant 0 : index
    %c19 = arith.constant 19 : index
    %12 = vector.load %arg1[%c0_13, %c0_14, %c19] : memref<2x8x432xf32, #tpu.memory_space<vmem>>, vector<1x8x384xf32>
    %13 = vector.shape_cast %12 : vector<1x8x384xf32> to vector<8x384xf32>
    %c32 = arith.constant 32 : index
    %c0_15 = arith.constant 0 : index
    %14 = vector.load %arg4[%c32, %c0_15] : memref<72x768xf32, #tpu.memory_space<vmem>>, vector<8x384xf32>
    tpu.vector_store %arg4[%c32, %c0_15], %13 {strides = array<i32>} : memref<72x768xf32, #tpu.memory_space<vmem>>, vector<8x384xf32>,
    %c0_16 = arith.constant 0 : index
    %c0_17 = arith.constant 0 : index
    %c20 = arith.constant 20 : index
    %15 = vector.load %arg1[%c0_16, %c0_17, %c20] : memref<2x8x432xf32, #tpu.memory_space<vmem>>, vector<1x8x384xf32>
    %16 = vector.shape_cast %15 : vector<1x8x384xf32> to vector<8x384xf32>
    %c40 = arith.constant 40 : index
    %c0_18 = arith.constant 0 : index
    %17 = vector.load %arg4[%c40, %c0_18] : memref<72x768xf32, #tpu.memory_space<vmem>>, vector<8x384xf32>
    tpu.vector_store %arg4[%c40, %c0_18], %16 {strides = array<i32>} : memref<72x768xf32, #tpu.memory_space<vmem>>, vector<8x384xf32>,
    %c0_19 = arith.constant 0 : index
    %c0_20 = arith.constant 0 : index
    %c36 = arith.constant 36 : index
    %18 = vector.load %arg1[%c0_19, %c0_20, %c36] : memref<2x8x432xf32, #tpu.memory_space<vmem>>, vector<1x8x384xf32>
    %19 = vector.shape_cast %18 : vector<1x8x384xf32> to vector<8x384xf32>
    %c48 = arith.constant 48 : index
    %c0_21 = arith.constant 0 : index
    %20 = vector.load %arg4[%c48, %c0_21] : memref<72x768xf32, #tpu.memory_space<vmem>>, vector<8x384xf32>
    tpu.vector_store %arg4[%c48, %c0_21], %19 {strides = array<i32>} : memref<72x768xf32, #tpu.memory_space<vmem>>, vector<8x384xf32>,
    %c0_22 = arith.constant 0 : index
    %c0_23 = arith.constant 0 : index
    %c37 = arith.constant 37 : index
    %21 = vector.load %arg1[%c0_22, %c0_23, %c37] : memref<2x8x432xf32, #tpu.memory_space<vmem>>, vector<1x8x384xf32>
    %22 = vector.shape_cast %21 : vector<1x8x384xf32> to vector<8x384xf32>
    %c56 = arith.constant 56 : index
    %c0_24 = arith.constant 0 : index
    %23 = vector.load %arg4[%c56, %c0_24] : memref<72x768xf32, #tpu.memory_space<vmem>>, vector<8x384xf32>
    tpu.vector_store %arg4[%c56, %c0_24], %22 {strides = array<i32>} : memref<72x768xf32, #tpu.memory_space<vmem>>, vector<8x384xf32>,
    %c0_25 = arith.constant 0 : index
    %c0_26 = arith.constant 0 : index
    %c38 = arith.constant 38 : index
    %24 = vector.load %arg1[%c0_25, %c0_26, %c38] : memref<2x8x432xf32, #tpu.memory_space<vmem>>, vector<1x8x384xf32>
    %25 = vector.shape_cast %24 : vector<1x8x384xf32> to vector<8x384xf32>
    %c64 = arith.constant 64 : index
    %c0_27 = arith.constant 0 : index
    %26 = vector.load %arg4[%c64, %c0_27] : memref<72x768xf32, #tpu.memory_space<vmem>>, vector<8x384xf32>
    tpu.vector_store %arg4[%c64, %c0_27], %25 {strides = array<i32>} : memref<72x768xf32, #tpu.memory_space<vmem>>, vector<8x384xf32>,
    %c1_28 = arith.constant 1 : index
    %c0_29 = arith.constant 0 : index
    %c0_30 = arith.constant 0 : index
    %27 = vector.load %arg1[%c1_28, %c0_29, %c0_30] : memref<2x8x432xf32, #tpu.memory_space<vmem>>, vector<1x8x384xf32>
    %28 = vector.shape_cast %27 : vector<1x8x384xf32> to vector<8x384xf32>
    %c0_31 = arith.constant 0 : index
    %c384 = arith.constant 384 : index
    %29 = vector.load %arg4[%c0_31, %c384] : memref<72x768xf32, #tpu.memory_space<vmem>>, vector<8x384xf32>
    tpu.vector_store %arg4[%c0_31, %c384], %28 {strides = array<i32>} : memref<72x768xf32, #tpu.memory_space<vmem>>, vector<8x384xf32>,
    %c1_32 = arith.constant 1 : index
    %c0_33 = arith.constant 0 : index
    %c1_34 = arith.constant 1 : index
    %30 = vector.load %arg1[%c1_32, %c0_33, %c1_34] : memref<2x8x432xf32, #tpu.memory_space<vmem>>, vector<1x8x384xf32>
    %31 = vector.shape_cast %30 : vector<1x8x384xf32> to vector<8x384xf32>
    %c8_35 = arith.constant 8 : index
    %c384_36 = arith.constant 384 : index
    %32 = vector.load %arg4[%c8_35, %c384_36] : memref<72x768xf32, #tpu.memory_space<vmem>>, vector<8x384xf32>
    tpu.vector_store %arg4[%c8_35, %c384_36], %31 {strides = array<i32>} : memref<72x768xf32, #tpu.memory_space<vmem>>, vector<8x384xf32>,
    %c1_37 = arith.constant 1 : index
    %c0_38 = arith.constant 0 : index
    %c2_39 = arith.constant 2 : index
    %33 = vector.load %arg1[%c1_37, %c0_38, %c2_39] : memref<2x8x432xf32, #tpu.memory_space<vmem>>, vector<1x8x384xf32>
    %34 = vector.shape_cast %33 : vector<1x8x384xf32> to vector<8x384xf32>
    %c16_40 = arith.constant 16 : index
    %c384_41 = arith.constant 384 : index
    %35 = vector.load %arg4[%c16_40, %c384_41] : memref<72x768xf32, #tpu.memory_space<vmem>>, vector<8x384xf32>
    tpu.vector_store %arg4[%c16_40, %c384_41], %34 {strides = array<i32>} : memref<72x768xf32, #tpu.memory_space<vmem>>, vector<8x384xf32>,
    %c1_42 = arith.constant 1 : index
    %c0_43 = arith.constant 0 : index
    %c18_44 = arith.constant 18 : index
    %36 = vector.load %arg1[%c1_42, %c0_43, %c18_44] : memref<2x8x432xf32, #tpu.memory_space<vmem>>, vector<1x8x384xf32>
    %37 = vector.shape_cast %36 : vector<1x8x384xf32> to vector<8x384xf32>
    %c24_45 = arith.constant 24 : index
    %c384_46 = arith.constant 384 : index
    %38 = vector.load %arg4[%c24_45, %c384_46] : memref<72x768xf32, #tpu.memory_space<vmem>>, vector<8x384xf32>
    tpu.vector_store %arg4[%c24_45, %c384_46], %37 {strides = array<i32>} : memref<72x768xf32, #tpu.memory_space<vmem>>, vector<8x384xf32>,
    %c1_47 = arith.constant 1 : index
    %c0_48 = arith.constant 0 : index
    %c19_49 = arith.constant 19 : index
    %39 = vector.load %arg1[%c1_47, %c0_48, %c19_49] : memref<2x8x432xf32, #tpu.memory_space<vmem>>, vector<1x8x384xf32>
    %40 = vector.shape_cast %39 : vector<1x8x384xf32> to vector<8x384xf32>
    %c32_50 = arith.constant 32 : index
    %c384_51 = arith.constant 384 : index
    %41 = vector.load %arg4[%c32_50, %c384_51] : memref<72x768xf32, #tpu.memory_space<vmem>>, vector<8x384xf32>
    tpu.vector_store %arg4[%c32_50, %c384_51], %40 {strides = array<i32>} : memref<72x768xf32, #tpu.memory_space<vmem>>, vector<8x384xf32>,
    %c1_52 = arith.constant 1 : index
    %c0_53 = arith.constant 0 : index
    %c20_54 = arith.constant 20 : index
    %42 = vector.load %arg1[%c1_52, %c0_53, %c20_54] : memref<2x8x432xf32, #tpu.memory_space<vmem>>, vector<1x8x384xf32>
    %43 = vector.shape_cast %42 : vector<1x8x384xf32> to vector<8x384xf32>
    %c40_55 = arith.constant 40 : index
    %c384_56 = arith.constant 384 : index
    %44 = vector.load %arg4[%c40_55, %c384_56] : memref<72x768xf32, #tpu.memory_space<vmem>>, vector<8x384xf32>
    tpu.vector_store %arg4[%c40_55, %c384_56], %43 {strides = array<i32>} : memref<72x768xf32, #tpu.memory_space<vmem>>, vector<8x384xf32>,
    %c1_57 = arith.constant 1 : index
    %c0_58 = arith.constant 0 : index
    %c36_59 = arith.constant 36 : index
    %45 = vector.load %arg1[%c1_57, %c0_58, %c36_59] : memref<2x8x432xf32, #tpu.memory_space<vmem>>, vector<1x8x384xf32>
    %46 = vector.shape_cast %45 : vector<1x8x384xf32> to vector<8x384xf32>
    %c48_60 = arith.constant 48 : index
    %c384_61 = arith.constant 384 : index
    %47 = vector.load %arg4[%c48_60, %c384_61] : memref<72x768xf32, #tpu.memory_space<vmem>>, vector<8x384xf32>
    tpu.vector_store %arg4[%c48_60, %c384_61], %46 {strides = array<i32>} : memref<72x768xf32, #tpu.memory_space<vmem>>, vector<8x384xf32>,
    %c1_62 = arith.constant 1 : index
    %c0_63 = arith.constant 0 : index
    %c37_64 = arith.constant 37 : index
    %48 = vector.load %arg1[%c1_62, %c0_63, %c37_64] : memref<2x8x432xf32, #tpu.memory_space<vmem>>, vector<1x8x384xf32>
    %49 = vector.shape_cast %48 : vector<1x8x384xf32> to vector<8x384xf32>
    %c56_65 = arith.constant 56 : index
    %c384_66 = arith.constant 384 : index
    %50 = vector.load %arg4[%c56_65, %c384_66] : memref<72x768xf32, #tpu.memory_space<vmem>>, vector<8x384xf32>
    tpu.vector_store %arg4[%c56_65, %c384_66], %49 {strides = array<i32>} : memref<72x768xf32, #tpu.memory_space<vmem>>, vector<8x384xf32>,
    %c1_67 = arith.constant 1 : index
    %c0_68 = arith.constant 0 : index
    %c38_69 = arith.constant 38 : index
    %51 = vector.load %arg1[%c1_67, %c0_68, %c38_69] : memref<2x8x432xf32, #tpu.memory_space<vmem>>, vector<1x8x384xf32>
    %52 = vector.shape_cast %51 : vector<1x8x384xf32> to vector<8x384xf32>
    %c64_70 = arith.constant 64 : index
    %c384_71 = arith.constant 384 : index
    %53 = vector.load %arg4[%c64_70, %c384_71] : memref<72x768xf32, #tpu.memory_space<vmem>>, vector<8x384xf32>
    tpu.vector_store %arg4[%c64_70, %c384_71], %52 {strides = array<i32>} : memref<72x768xf32, #tpu.memory_space<vmem>>, vector<8x384xf32>,
    %c0_72 = arith.constant 0 : index
    %c0_73 = arith.constant 0 : index
    %54 = vector.load %arg2[%c0_72, %c0_73] : memref<16x72xf32, #tpu.memory_space<vmem>>, vector<16x72xf32>
    %c0_74 = arith.constant 0 : index
    %c0_75 = arith.constant 0 : index
    %55 = vector.load %arg4[%c0_74, %c0_75] : memref<72x768xf32, #tpu.memory_space<vmem>>, vector<72x768xf32>
    %cst = arith.constant dense<0.000000e+00> : vector<16x768xf32>
    %56 = tpu.matmul %54, %55, %cst {dimension_numbers = #tpu.dot_dimension_numbers<[1], [0], [0], [1], [0, 0, 1, 1], [], []>} : vector<16x72xf32>, vector<72x768xf32>, vector<16x768xf32> -> vector<16x768xf32>
    %c0_76 = arith.constant 0 : index
    %c0_77 = arith.constant 0 : index
    %57 = vector.load %arg3[%c0_76, %c0_77] : memref<16x768xf32, #tpu.memory_space<vmem>>, vector<16x768xf32>
    tpu.vector_store %arg3[%c0_76, %c0_77], %56 {strides = array<i32>} : memref<16x768xf32, #tpu.memory_space<vmem>>, vector<16x768xf32>,
    return
  }
  func.func @transform_0(%arg0: i32) -> (i32, i32, i32) {
    %c0_i32 = arith.constant 0 : i32
    %c0_i32_0 = arith.constant 0 : i32
    %c0_i32_1 = arith.constant 0 : i32
    %c0_i32_2 = arith.constant 0 : i32
    return %c0_i32, %c0_i32_0, %c0_i32_1 : i32, i32, i32
  }
  func.func @transform_1(%arg0: i32) -> (i32, i32) {
    %c0_i32 = arith.constant 0 : i32
    %c0_i32_0 = arith.constant 0 : i32
    %c0_i32_1 = arith.constant 0 : i32
    return %c0_i32, %c0_i32_0 : i32, i32
  }
  func.func @transform_2(%arg0: i32) -> (i32, i32) {
    %c0_i32 = arith.constant 0 : i32
    %c0_i32_0 = arith.constant 0 : i32
    %c0_i32_1 = arith.constant 0 : i32
    return %c0_i32, %c0_i32_0 : i32, i32
  }
}

</mosaic_0001>

<bundles_post_ra>
// kernel: tpu_custom_call.1
= control target key start
LH: loop header
LB: loop body
LE: loop exit
PB: predicated region body
PF: predicated region fallthrough
CT: control target
= control target key end

     0   :  { %7 = vsyncpa [#allocation4], 0  ;;  %s1323_s0 = inlined_call_operand.hbm [shape: f32[2,8,432], index: 0, kind: input, shape index: {}]   ;;  %s1324_s1 = inlined_call_operand.hbm [shape: f32[16,72], index: 1, kind: input, shape index: {}]   ;;  %s1325_s2 = inlined_call_operand.hbm [shape: f32[16,768], index: 2, kind: output, shape index: {}]  }
   0x1   :  { %8 = vsyncpa [#allocation7], 0 }
   0x2   :  { %9 = vsyncpa [#allocation5], 0  ;;  %s1079_s9 = smov [#allocation3]   ;;  %s1007_s13 = scalar_lea.hbm %s1323_s0, 1024 }
   0x3   :  { %s15_s10 = sshll.u32 %s1079_s9, 4  ;;  %p1008_p0 = scmp.ne.s32.totalorder %s1323_s0, %s1007_s13  ;;  %s16_s10 = int_to_ptr.vmem [resolvable:$true] %s15_s10 }
   0x4   :  { %p1011_p1 = scmp.lt.u32.totalorder %s1007_s13, %s1323_s0 }
   0x6   :  { %p1013_p2 = pnand %p1011_p1, %p1008_p0 }
   0x8   :  { %1016 = shalt.err (!%p1013_p2)
}
   0x9   :  { %s1017_s18 = scalar_lea.vmem %s16_s10, 1024  ;;  %p1022_p4 = scmp.lt.s32.totalorder %s16_s10, %s16_s10 }
   0xa   :  { %p1018_p3 = scmp.ne.s32.totalorder %s16_s10, %s1017_s18  ;;  %p1023_p5 = scmp.lt.s32.totalorder %s1017_s18, %s1017_s18 }
   0xc   :  { %p1024_p6 = por %p1023_p5, %p1022_p4 }
   0xe   :  { %p1025_p7 = pnand %p1024_p6, %p1018_p3 }
  0x10   :  { %1028 = shalt.err (!%p1025_p7)
}
  0x11   :  { %s1080_s19 = smov 512   ;;  %s1081_s20 = smov 32  }
  0x12   :  { %21 = dma.hbm_to_vmem [thread:$0]  %s1323_s0, 1024, %s16_s10, [#allocation4], %s1080_s19, %s1080_s19, %s1081_s20  }
  0x13   :  { %s1082_s23 = smov [#allocation6]   ;;  %s1029_s27 = scalar_lea.hbm %s1324_s1, 256 }
  0x14   :  { %s27_s24 = sshll.u32 %s1082_s23, 4  ;;  %p1030_p8 = scmp.ne.s32.totalorder %s1324_s1, %s1029_s27  ;;  %s28_s24 = int_to_ptr.vmem [resolvable:$true] %s27_s24 }
  0x15   :  { %p1033_p9 = scmp.lt.u32.totalorder %s1029_s27, %s1324_s1 }
  0x17   :  { %p1035_p10 = pnand %p1033_p9, %p1030_p8 }
  0x19   :  { %1038 = shalt.err (!%p1035_p10)
}
  0x1a   :  { %s1039_s4 = scalar_lea.vmem %s28_s24, 256  ;;  %p1044_p12 = scmp.lt.s32.totalorder %s28_s24, %s28_s24 }
  0x1b   :  { %p1040_p11 = scmp.ne.s32.totalorder %s28_s24, %s1039_s4  ;;  %p1045_p13 = scmp.lt.s32.totalorder %s1039_s4, %s1039_s4 }
  0x1d   :  { %p1046_p0 = por %p1045_p13, %p1044_p12 }
  0x1f   :  { %p1047_p1 = pnand %p1046_p0, %p1040_p11 }
  0x21   :  { %1050 = shalt.err (!%p1047_p1)
}
  0x22   :  { %s1083_s0 = smov 128   ;;  %s1084_s5 = smov 8  }
  0x23   :  { %33 = dma.hbm_to_vmem [thread:$0]  %s1324_s1, 256, %s28_s24, [#allocation7], %s1083_s0, %s1083_s0, %s1084_s5  }
  0x24   :  { %1073 = dma.done.wait [#allocation4], 1024  }
  0x25   :  { %1074 = vsyncadd [#allocation4], 4294966272 }
  0x26   :  { %1075 = dma.done.wait [#allocation7], 256  }
  0x27   :  { %1076 = vsyncadd [#allocation7], 4294967040  ;;  %v1136_v0 = vld [vmem:[#allocation3 + $0x8] sm:$0xff]  ;;  %v1138_v1 = vld [vmem:[#allocation3 + $0x10] sm:$0xff]  ;;  %s1085_s1 = smov 127   ;;  %s1086_s8 = smov 126  }
  0x28   :  { %v1140_v2 = vld [vmem:[#allocation3] sm:$0xff]  ;;  %v867_v3 = vpack.i.bf16 %v1138_v1, %v1136_v0  ;;  %v49_v4 = vld [vmem:[#allocation3 + $0x18] sm:$0xff]  ;;  %v1146_v6 = vld [vmem:[#allocation3 + $0x28] sm:$0xff]  ;;  %s1087_s9 = smov 110   ;;  %s1088_s10 = smov 109   ;;  %v1093_v12 = vmov 0.0  }
  0x29   :  { %v1144_v5 = vld [vmem:[#allocation3 + $0x20] sm:$0xff]  ;;  %v877_v7 = vpack.i.bf16 %v49_v4, %v1140_v2  ;;  %s1089_s11 = smov 108   ;;  %s1090_s12 = smov 92   ;;  %v1166_v9 = vld [vmem:[#allocation3 + $0x30] sm:$0xff]  ;;  %v264_v10 = vld [vmem:[#allocation3 + $0x38] sm:$0xff]  ;;  %588 = vmatprep.mubr.f32.mxu0 %v1093_v12  ;;  %665 = vmatprep.mubr.f32.mxu1 %v1093_v12  ;;  %vm62_vm0 = vcmask 1039360  }
  0x2a   :  { %868 = vrot.lane.b32.xlu0 %v867_v3, %s1085_s1  ;;  %v872_v8 = vpack.i.bf16 %v1146_v6, %v1144_v5  ;;  %s1091_s13 = smov 91   ;;  %s1092_s14 = smov 90   ;;  %v972_v11 = vpack.i.bf16 %v264_v10, %v1166_v9  ;;  %vm88_vm1 = vcmask 1031168   ;;  %vm114_vm2 = vcmask 900096  }
  0x2b   :  { %878 = vrot.lane.b32.xlu1 %v877_v7, %s1085_s1  ;;  %vm140_vm3 = vcmask 891904   ;;  %vm166_vm4 = vcmask 883712   ;;  %vm192_vm5 = vcmask 752640   ;;  %vm218_vm6 = vcmask 744448   ;;  %s1094_s15 = smov [#allocation8]  }
  0x2c   :  { %vm244_vm7 = vcmask 736256   ;;  %vm517_vm8 = vcmask 588800   ;;  %s772_s16 = sshll.u32 %s1094_s15, 4  ;;  %s773_s16 = int_to_ptr.vmem [resolvable:$true] %s772_s16 }
  0x2d   :  { %s1051_s17 = scalar_lea.vmem %s773_s16, 1536  ;;  %p1056_p3 = scmp.lt.s32.totalorder %s773_s16, %s773_s16 }
  0x2e   :  { %873 = vrot.lane.b32.xlu0 %v872_v8, %s1085_s1  ;;  %p1052_p2 = scmp.ne.s32.totalorder %s773_s16, %s1051_s17  ;;  %p1057_p4 = scmp.lt.s32.totalorder %s1051_s17, %s1051_s17 }
  0x2f   :  { %883 = vrot.lane.b32.xlu1 %v867_v3, %s1086_s8 }
  0x30   :  { %p1058_p5 = por %p1057_p4, %p1056_p3 }
  0x32   :  { %888 = vrot.lane.b32.xlu0 %v867_v3, %s1087_s9  ;;  %p1059_p6 = pnand %p1058_p5, %p1052_p2 }
  0x33   :  { %893 = vrot.lane.b32.xlu1 %v872_v8, %s1086_s8 }
  0x36   :  { %898 = vrot.lane.b32.xlu0 %v872_v8, %s1087_s9 }
  0x37   :  { %903 = vrot.lane.b32.xlu1 %v877_v7, %s1086_s8 }
  0x3a   :  { %908 = vrot.lane.b32.xlu0 %v877_v7, %s1087_s9 }
  0x3b   :  { %913 = vrot.lane.b32.xlu1 %v867_v3, %s1088_s10 }
  0x3e   :  { %918 = vrot.lane.b32.xlu0 %v867_v3, %s1089_s11 }
  0x3f   :  { %923 = vrot.lane.b32.xlu1 %v872_v8, %s1088_s10 }
  0x42   :  { %928 = vrot.lane.b32.xlu0 %v872_v8, %s1089_s11 }
  0x43   :  { %933 = vrot.lane.b32.xlu1 %v877_v7, %s1088_s10 }
  0x46   :  { %938 = vrot.lane.b32.xlu0 %v877_v7, %s1089_s11 }
  0x47   :  { %943 = vrot.lane.b32.xlu1 %v867_v3, %s1090_s12 }
  0x4a   :  { %948 = vrot.lane.b32.xlu0 %v867_v3, %s1091_s13 }
  0x4b   :  { %953 = vrot.lane.b32.xlu1 %v872_v8, %s1090_s12 }
  0x4e   :  { %958 = vrot.lane.b32.xlu0 %v872_v8, %s1091_s13 }
  0x4f   :  { %963 = vrot.lane.b32.xlu1 %v877_v7, %s1090_s12 }
  0x52   :  { %968 = vrot.lane.b32.xlu0 %v877_v7, %s1091_s13 }
  0x53   :  { %238 = vrot.lane.b32.xlu1 %v1136_v0, %s1092_s14 }
  0x56   :  { %240 = vrot.lane.b32.xlu0 %v1138_v1, %s1092_s14 }
  0x57   :  { %973 = vrot.lane.b32.xlu1 %v972_v11, %s1085_s1 }
  0x5a   :  { %444 = vrot.lane.b32.xlu0 %v1144_v5, %s1092_s14 }
  0x5b   :  { %446 = vrot.lane.b32.xlu1 %v1146_v6, %s1092_s14 }
  0x5e   :  { %236 = vrot.lane.b32.xlu0 %v1140_v2, %s1092_s14 }
  0x5f   :  { %242 = vrot.lane.b32.xlu1 %v49_v4, %s1092_s14 }
  0x62   :  { %978 = vrot.lane.b32.xlu0 %v972_v11, %s1086_s8 }
  0x63   :  { %983 = vrot.lane.b32.xlu1 %v972_v11, %s1087_s9 }
  0x66   :  { %988 = vrot.lane.b32.xlu0 %v972_v11, %s1088_s10 }
  0x67   :  { %993 = vrot.lane.b32.xlu1 %v972_v11, %s1089_s11 }
  0x6a   :  { %998 = vrot.lane.b32.xlu0 %v972_v11, %s1090_s12 }
  0x6b   :  { %1003 = vrot.lane.b32.xlu1 %v972_v11, %s1091_s13 }
  0x6e   :  { %448 = vrot.lane.b32.xlu0 %v1166_v9, %s1092_s14 }
  0x6f   :  { %450 = vrot.lane.b32.xlu1 %v264_v10, %s1092_s14 }
  0x9c   :  { %v869_v13 = vpop.permute.xlu0 %868 }
  0x9d   :  { %v871_v14 = vunpack.i.h.bf16 %v869_v13  ;;  %v870_v15 = vunpack.i.l.bf16 %v869_v13  ;;  %v879_v16 = vpop.permute.xlu1 %878 }
  0x9e   :  { %v881_v17 = vunpack.i.h.bf16 %v879_v16  ;;  %v880_v18 = vunpack.i.l.bf16 %v879_v16 }
  0x9f   :  { %v64_v19 = vsel %vm62_vm0, %v870_v15, %v871_v14 }
  0xa0   :  { %v1183_v20 = vpop.permute.xlu0 %873  ;;  %v791_v21 = vpack.c.bf16 %v64_v19, %v1136_v0  ;;  %v63_v22 = vsel %vm62_vm0, %v880_v18, %v870_v15  ;;  %v65_v27 = vsel %vm62_vm0, %v871_v14, %v881_v17 }
  0xa1   :  { %v876_v23 = vunpack.i.h.bf16 %v1183_v20  ;;  %v875_v24 = vunpack.i.l.bf16 %v1183_v20  ;;  %v884_v25 = vpop.permute.xlu1 %883  ;;  %v793_v26 = vpack.c.bf16 %v63_v22, %v1140_v2  ;;  %v809_v36 = vpack.c.bf16 %v65_v27, %v1138_v1 }
  0xa2   :  { %792 = vmatprep.subr.bf16.mxu0 %v791_v21  ;;  %v886_v28 = vunpack.i.h.bf16 %v884_v25  ;;  %v885_v29 = vunpack.i.l.bf16 %v884_v25 }
  0xa3   :  { %794 = vmatpush1.bf16.msra.mxu0 %v793_v26  ;;  %v277_v30 = vsel %vm62_vm0, %v875_v24, %v876_v23 }
  0xa4   :  { %v889_v31 = vpop.permute.xlu0 %888  ;;  %v807_v32 = vpack.c.bf16 %v277_v30, %v1144_v5  ;;  %v90_v39 = vsel %vm88_vm1, %v885_v29, %v886_v28 }
  0xa5   :  { %v891_v33 = vunpack.i.h.bf16 %v889_v31  ;;  %v890_v34 = vunpack.i.l.bf16 %v889_v31  ;;  %v1195_v35 = vpop.permute.xlu1 %893 }
  0xa6   :  { %808 = vmatprep.subr.bf16.mxu1 %v807_v32  ;;  %v896_v37 = vunpack.i.h.bf16 %v1195_v35  ;;  %v895_v38 = vunpack.i.l.bf16 %v1195_v35 }
  0xa7   :  { %810 = vmatpush1.bf16.msra.mxu1 %v809_v36  ;;  %v116_v40 = vsel %vm114_vm2, %v890_v34, %v891_v33 }
  0xa8   :  { %v1202_v41 = vpop.permute.xlu0 %898  ;;  %v795_v42 = vpack.c.bf16 %v116_v40, %v90_v39  ;;  %v302_v48 = vsel %vm88_vm1, %v895_v38, %v896_v37 }
  0xa9   :  { %v901_v43 = vunpack.i.h.bf16 %v1202_v41  ;;  %v900_v44 = vunpack.i.l.bf16 %v1202_v41  ;;  %v904_v45 = vpop.permute.xlu1 %903 }
  0xaa   :  { %v906_v46 = vunpack.i.h.bf16 %v904_v45  ;;  %v905_v47 = vunpack.i.l.bf16 %v904_v45  ;;  %796 = vmatprep.subr.bf16.mxu0 %v795_v42 }
  0xab   :  { %v327_v49 = vsel %vm114_vm2, %v900_v44, %v901_v43 }
  0xac   :  { %v909_v50 = vpop.permute.xlu0 %908  ;;  %v811_v51 = vpack.c.bf16 %v327_v49, %v302_v48  ;;  %v89_v55 = vsel %vm88_vm1, %v905_v47, %v885_v29  ;;  %v91_v56 = vsel %vm88_vm1, %v886_v28, %v906_v46 }
  0xad   :  { %v911_v52 = vunpack.i.h.bf16 %v909_v50  ;;  %v910_v53 = vunpack.i.l.bf16 %v909_v50  ;;  %v914_v54 = vpop.permute.xlu1 %913 }
  0xae   :  { %812 = vmatprep.subr.bf16.mxu1 %v811_v51  ;;  %v916_v57 = vunpack.i.h.bf16 %v914_v54  ;;  %v915_v58 = vunpack.i.l.bf16 %v914_v54 }
  0xaf   :  { %v115_v59 = vsel %vm114_vm2, %v910_v53, %v890_v34  ;;  %v117_v60 = vsel %vm114_vm2, %v891_v33, %v911_v52 }
  0xb0   :  { %v919_v61 = vpop.permute.xlu0 %918  ;;  %v797_v62 = vpack.c.bf16 %v115_v59, %v89_v55  ;;  %v813_v63 = vpack.c.bf16 %v117_v60, %v91_v56  ;;  %v142_v5 = vsel %vm140_vm3, %v915_v58, %v916_v57 }
  0xb1   :  { %v921_v0 = vunpack.i.h.bf16 %v919_v61  ;;  %v920_v1 = vunpack.i.l.bf16 %v919_v61  ;;  %v1216_v2 = vpop.permute.xlu1 %923 }
  0xb2   :  { %798 = vmatpush1.bf16.msra.mxu0 %v797_v62  ;;  %814 = vmatpush1.bf16.msra.mxu1 %v813_v63  ;;  %v926_v3 = vunpack.i.h.bf16 %v1216_v2  ;;  %v925_v4 = vunpack.i.l.bf16 %v1216_v2 }
  0xb3   :  { %v168_v7 = vsel %vm166_vm4, %v920_v1, %v921_v0 }
  0xb4   :  { %v1222_v8 = vpop.permute.xlu0 %928  ;;  %v799_v10 = vpack.c.bf16 %v168_v7, %v142_v5  ;;  %v352_v17 = vsel %vm140_vm3, %v925_v4, %v926_v3 }
  0xb5   :  { %v931_v11 = vunpack.i.h.bf16 %v1222_v8  ;;  %v930_v13 = vunpack.i.l.bf16 %v1222_v8  ;;  %v934_v14 = vpop.permute.xlu1 %933 }
  0xb6   :  { %v936_v15 = vunpack.i.h.bf16 %v934_v14  ;;  %v935_v16 = vunpack.i.l.bf16 %v934_v14  ;;  %800 = vmatprep.subr.bf16.mxu0 %v799_v10 }
  0xb7   :  { %v377_v18 = vsel %vm166_vm4, %v930_v13, %v931_v11 }
  0xb8   :  { %v939_v19 = vpop.permute.xlu0 %938  ;;  %v815_v21 = vpack.c.bf16 %v377_v18, %v352_v17  ;;  %v141_v26 = vsel %vm140_vm3, %v935_v16, %v915_v58  ;;  %v143_v27 = vsel %vm140_vm3, %v916_v57, %v936_v15 }
  0xb9   :  { %v941_v22 = vunpack.i.h.bf16 %v939_v19  ;;  %v940_v24 = vunpack.i.l.bf16 %v939_v19  ;;  %v944_v25 = vpop.permute.xlu1 %943 }
  0xba   :  { %816 = vmatprep.subr.bf16.mxu1 %v815_v21  ;;  %v946_v28 = vunpack.i.h.bf16 %v944_v25  ;;  %v945_v29 = vunpack.i.l.bf16 %v944_v25  ;;  %v1267_v25 = vld [vmem:[#allocation6] sm:$0xff] }
  0xbb   :  { %v167_v30 = vsel %vm166_vm4, %v940_v24, %v920_v1  ;;  %v169_v31 = vsel %vm166_vm4, %v921_v0, %v941_v22 }
  0xbc   :  { %v949_v32 = vpop.permute.xlu0 %948  ;;  %v801_v33 = vpack.c.bf16 %v167_v30, %v141_v26  ;;  %v817_v34 = vpack.c.bf16 %v169_v31, %v143_v27  ;;  %v194_v44 = vsel %vm192_vm5, %v945_v29, %v946_v28 }
  0xbd   :  { %v951_v36 = vunpack.i.h.bf16 %v949_v32  ;;  %v950_v38 = vunpack.i.l.bf16 %v949_v32  ;;  %v1236_v39 = vpop.permute.xlu1 %953 }
  0xbe   :  { %802 = vmatpush1.bf16.msra.mxu0 %v801_v33  ;;  %818 = vmatpush1.bf16.msra.mxu1 %v817_v34  ;;  %v956_v40 = vunpack.i.h.bf16 %v1236_v39  ;;  %v955_v42 = vunpack.i.l.bf16 %v1236_v39 }
  0xbf   :  { %v220_v45 = vsel %vm218_vm6, %v950_v38, %v951_v36 }
  0xc0   :  { %v1242_v46 = vpop.permute.xlu0 %958  ;;  %v803_v47 = vpack.c.bf16 %v220_v45, %v194_v44  ;;  %v402_v53 = vsel %vm192_vm5, %v955_v42, %v956_v40 }
  0xc1   :  { %v961_v48 = vunpack.i.h.bf16 %v1242_v46  ;;  %v960_v49 = vunpack.i.l.bf16 %v1242_v46  ;;  %v964_v50 = vpop.permute.xlu1 %963 }
  0xc2   :  { %804 = vmatprep.subr.bf16.mxu0 %v803_v47  ;;  %v966_v51 = vunpack.i.h.bf16 %v964_v50  ;;  %v965_v52 = vunpack.i.l.bf16 %v964_v50 }
  0xc3   :  { %v427_v54 = vsel %vm218_vm6, %v960_v49, %v961_v48 }
  0xc4   :  { %v969_v55 = vpop.permute.xlu0 %968  ;;  %v819_v56 = vpack.c.bf16 %v427_v54, %v402_v53  ;;  %v193_v60 = vsel %vm192_vm5, %v965_v52, %v945_v29  ;;  %v195_v62 = vsel %vm192_vm5, %v946_v28, %v966_v51 }
  0xc5   :  { %v971_v57 = vunpack.i.h.bf16 %v969_v55  ;;  %v970_v58 = vunpack.i.l.bf16 %v969_v55  ;;  %v239_v59 = vpop.permute.xlu1 %238 }
  0xc6   :  { %820 = vmatprep.subr.bf16.mxu1 %v819_v56 }
  0xc7   :  { %v219_v61 = vsel %vm218_vm6, %v970_v58, %v950_v38  ;;  %v221_v63 = vsel %vm218_vm6, %v951_v36, %v971_v57 }
  0xc8   :  { %v241_v0 = vpop.permute.xlu0 %240  ;;  %v805_v1 = vpack.c.bf16 %v219_v61, %v193_v60  ;;  %v821_v4 = vpack.c.bf16 %v221_v63, %v195_v62 }
  0xc9   :  { %v974_v5 = vpop.permute.xlu1 %973  ;;  %v246_v7 = vsel %vm244_vm7, %v239_v59, %v241_v0 }
  0xca   :  { %v976_v10 = vunpack.i.h.bf16 %v974_v5  ;;  %v975_v13 = vunpack.i.l.bf16 %v974_v5  ;;  %806 = vmatpush1.bf16.msra.mxu0 %v805_v1  ;;  %822 = vmatpush1.bf16.msra.mxu1 %v821_v4 }
  0xcb   :  { %540 = vmatprep.subr.mxu0 %v246_v7 }
  0xcc   :  { %v445_v14 = vpop.permute.xlu0 %444  ;;  %v279_v17 = vsel %vm62_vm0, %v975_v13, %v976_v10  ;;  %v278_v18 = vsel %vm62_vm0, %v876_v23, %v975_v13 }
  0xcd   :  { %v1257_v15 = vpop.permute.xlu1 %446  ;;  %v823_v24 = vpack.c.bf16 %v279_v17, %v1166_v9  ;;  %v825_v27 = vpack.c.bf16 %v278_v18, %v1146_v6  ;;  %v462_v9 = vld [vmem:[#allocation6 + $0x8] sm:$0xff] }
  0xce   :  { %v452_v16 = vsel %vm244_vm7, %v445_v14, %v1257_v15 }
  0xcf   :  { %617 = vmatprep.subr.mxu1 %v452_v16 }
  0xd0   :  { %v237_v19 = vpop.permute.xlu0 %236 }
  0xd1   :  { %v243_v21 = vpop.permute.xlu1 %242  ;;  %v245_v22 = vsel %vm244_vm7, %v237_v19, %v239_v59 }
  0xd2   :  { %541 = vmatpush1.msra.mxu0 %v245_v22  ;;  %v247_v26 = vsel %vm244_vm7, %v241_v0, %v243_v21 }
  0xd3   :  { %618 = vmatpush1.msra.mxu1 %v247_v26  ;;  %824 = vmatprep.subr.bf16.mxu0 %v823_v24 }
  0xd4   :  { %839 = vmatprep.subr.bf16.mxu1 %v823_v24  ;;  %v979_v20 = vpop.permute.xlu0 %978  ;;  %785 = vmatmul.mubr.msk.f32.vlgmr.msra.gmra.mrb[0].mxu0 %vm517_vm8, %v1267_v25 }
  0xd5   :  { %v981_v23 = vunpack.i.h.bf16 %v979_v20  ;;  %v980_v28 = vunpack.i.l.bf16 %v979_v20  ;;  %v984_v29 = vpop.permute.xlu1 %983  ;;  %787 = vmatmul.mubr.msk.f32.vlgmr.msra.gmra.mrb[0].mxu1 %vm517_vm8, %v1267_v25  ;;  %826 = vmatpush1.bf16.msra.mxu0 %v825_v27 }
  0xd6   :  { %v986_v30 = vunpack.i.h.bf16 %v984_v29  ;;  %v985_v31 = vunpack.i.l.bf16 %v984_v29  ;;  %844 = vmatpush1.bf16.msra.mxu1 %v825_v27  ;;  %594 = vmatprep.mubr.f32.mxu0 %v1093_v12 }
  0xd7   :  { %v303_v6 = vsel %vm88_vm1, %v896_v37, %v980_v28  ;;  %v304_v32 = vsel %vm88_vm1, %v980_v28, %v981_v23  ;;  %671 = vmatprep.mubr.f32.mxu1 %v1093_v12 }
  0xd8   :  { %v328_v33 = vsel %vm114_vm2, %v901_v43, %v985_v31  ;;  %v989_v34 = vpop.permute.xlu0 %988  ;;  %v329_v36 = vsel %vm114_vm2, %v985_v31, %v986_v30  ;;  %786 = vmatmul.mubr.msk.f32.gmra.mrb[2].mxu0 %vm517_vm8, %v462_v9 }
  0xd9   :  { %v829_v38 = vpack.c.bf16 %v328_v33, %v303_v6  ;;  %v991_v42 = vunpack.i.h.bf16 %v989_v34  ;;  %v990_v44 = vunpack.i.l.bf16 %v989_v34  ;;  %v994_v45 = vpop.permute.xlu1 %993  ;;  %v827_v35 = vpack.c.bf16 %v329_v36, %v304_v32  ;;  %788 = vmatmul.mubr.msk.f32.gmra.mrb[2].mxu1 %vm517_vm8, %v462_v9  ;;  %742 = vmatprep.mubr.f32.mxu0 %v1093_v12 }
  0xda   :  { %v996_v37 = vunpack.i.h.bf16 %v994_v45  ;;  %v995_v47 = vunpack.i.l.bf16 %v994_v45  ;;  %748 = vmatprep.mubr.f32.mxu1 %v1093_v12 }
  0xdb   :  { %v353_v41 = vsel %vm140_vm3, %v926_v3, %v990_v44  ;;  %828 = vmatprep.subr.bf16.mxu0 %v827_v35  ;;  %840 = vmatprep.subr.bf16.mxu1 %v827_v35  ;;  %v354_v43 = vsel %vm140_vm3, %v990_v44, %v991_v42 }
  0xdc   :  { %v378_v49 = vsel %vm166_vm4, %v931_v11, %v995_v47  ;;  %830 = vmatpush1.bf16.msra.mxu0 %v829_v38  ;;  %845 = vmatpush1.bf16.msra.mxu1 %v829_v38  ;;  %v999_v50 = vpop.permute.xlu0 %998  ;;  %v379_v51 = vsel %vm166_vm4, %v995_v47, %v996_v37 }
  0xdd   :  { %v833_v52 = vpack.c.bf16 %v378_v49, %v353_v41  ;;  %v1001_v53 = vunpack.i.h.bf16 %v999_v50  ;;  %v1000_v12 = vunpack.i.l.bf16 %v999_v50  ;;  %v1004_v54 = vpop.permute.xlu1 %1003  ;;  %v831_v2 = vpack.c.bf16 %v379_v51, %v354_v43 }
  0xde   :  { %v1006_v55 = vunpack.i.h.bf16 %v1004_v54  ;;  %v1005_v3 = vunpack.i.l.bf16 %v1004_v54 }
  0xdf   :  { %v403_v56 = vsel %vm192_vm5, %v956_v40, %v1000_v12  ;;  %832 = vmatprep.subr.bf16.mxu0 %v831_v2  ;;  %841 = vmatprep.subr.bf16.mxu1 %v831_v2  ;;  %v404_v8 = vsel %vm192_vm5, %v1000_v12, %v1001_v53 }
  0xe0   :  { %v428_v11 = vsel %vm218_vm6, %v961_v48, %v1005_v3  ;;  %834 = vmatpush1.bf16.msra.mxu0 %v833_v52  ;;  %846 = vmatpush1.bf16.msra.mxu1 %v833_v52  ;;  %v429_v57 = vsel %vm218_vm6, %v1005_v3, %v1006_v55  ;;  %v449_v59 = vpop.permute.xlu0 %448 }
  0xe1   :  { %v837_v58 = vpack.c.bf16 %v428_v11, %v403_v56  ;;  %v835_v60 = vpack.c.bf16 %v429_v57, %v404_v8  ;;  %v451_v61 = vpop.permute.xlu1 %450  ;;  %v453_v40 = vsel %vm244_vm7, %v1257_v15, %v449_v59 }
  0xe2   :  { %v454_v39 = vsel %vm244_vm7, %v449_v59, %v451_v61 }
  0xe3   :  { %836 = vmatprep.subr.bf16.mxu0 %v835_v60  ;;  %842 = vmatprep.subr.bf16.mxu1 %v835_v60 }
  0xe4   :  { %838 = vmatpush1.bf16.msra.mxu0 %v837_v58  ;;  %847 = vmatpush1.bf16.msra.mxu1 %v837_v58 }
  0xe5   :  { %694 = vmatprep.subr.mxu0 %v454_v39  ;;  %843 = vmatprep.subr.mxu1 %v454_v39 }
  0xe8   :  { %695 = vmatpush1.msra.mxu0 %v453_v40  ;;  %848 = vmatpush1.msra.mxu1 %v453_v40 }
  0xe9   :  { %789 = vmatmul.mubr.msk.f32.vlgmr.msra.gmra.mrb[4].mxu0 %vm517_vm8, %v1267_v25  ;;  %790 = vmatmul.mubr.msk.f32.vlgmr.msra.gmra.mrb[4].mxu1 %vm517_vm8, %v462_v9 }
 0x1a7   :  { %v590_v46 = vpop.f32.mrb[0].mxu0 }
 0x1a8   :  { %755 = vst [vmem:[#allocation8] sm:$0xff] %v590_v46  ;;  %v667_v48 = vpop.f32.mrb[0].mxu1  ;;  %v592_v62 = vpop.f32.mrb[1].mxu0 }
 0x1a9   :  { %757 = vst [vmem:[#allocation8 + $0x10] sm:$0xff] %v667_v48  ;;  %756 = vst [vmem:[#allocation8 + $0x8] sm:$0xff] %v592_v62  ;;  %v669_v63 = vpop.f32.mrb[1].mxu1 }
 0x1aa   :  { %758 = vst [vmem:[#allocation8 + $0x18] sm:$0xff] %v669_v63 }
 0x1ab   :  { %v596_v0 = vpop.f32.mrb[2].mxu0 }
 0x1ac   :  { %761 = vst [vmem:[#allocation8 + $0x30] sm:$0xff] %v596_v0  ;;  %v673_v1 = vpop.f32.mrb[2].mxu1  ;;  %v598_v4 = vpop.f32.mrb[3].mxu0 }
 0x1ad   :  { %763 = vst [vmem:[#allocation8 + $0x40] sm:$0xff] %v673_v1  ;;  %762 = vst [vmem:[#allocation8 + $0x38] sm:$0xff] %v598_v4  ;;  %v675_v5 = vpop.f32.mrb[3].mxu1 }
 0x1ae   :  { %764 = vst [vmem:[#allocation8 + $0x48] sm:$0xff] %v675_v5 }
 0x1bc   :  { %v744_v7 = vpop.f32.mrb[4].mxu0  ;;  %v750_v10 = vpop.f32.mrb[4].mxu1 }
 0x1bd   :  { %759 = vst [vmem:[#allocation8 + $0x20] sm:$0xff] %v744_v7  ;;  %765 = vst [vmem:[#allocation8 + $0x50] sm:$0xff] %v750_v10  ;;  %v746_v13 = vpop.f32.mrb[5].mxu0  ;;  %v752_v14 = vpop.f32.mrb[5].mxu1 }
 0x1be   :  { %760 = vst [vmem:[#allocation8 + $0x28] sm:$0xff] %v746_v13  ;;  %766 = vst [vmem:[#allocation8 + $0x58] sm:$0xff] %v752_v14 }
 0x1bf   :  { %1062 = shalt.err (!%p1059_p6)
}
 0x1c0   :  { %s1063_s20 = scalar_lea.hbm %s1325_s2, 1536 }
 0x1c1   :  { %p1064_p7 = scmp.ne.s32.totalorder %s1325_s2, %s1063_s20  ;;  %p1067_p8 = scmp.lt.u32.totalorder %s1063_s20, %s1325_s2 }
 0x1c3   :  { %p1069_p9 = pnand %p1067_p8, %p1064_p7 }
 0x1c5   :  { %1072 = shalt.err (!%p1069_p9)
}
 0x1c6   :  { %s1095_s25 = smov 768   ;;  %s1096_s26 = smov 48  }
 0x1c7   :  { %778 = dma.vmem_to_hbm [thread:$0]  %s773_s16, 1536, %s1325_s2, [#allocation5], %s1095_s25, %s1095_s25, %s1096_s26  }
 0x1c8   :  { %1077 = dma.done.wait [#allocation5], 1536  }
 0x1c9   :  { %1078 = vsyncadd [#allocation5], 4294965760 }
 0x1ca   :  { %782 = vsyncpa [#allocation4], 1 }
 0x1cb   :  { %783 = vsyncpa [#allocation7], 1 }
 0x1cc   :  { %784 = vsyncpa [#allocation5], 1 }

</bundles_post_ra>
